<compile_context>
chip_gen: v7x
topology: tpu7x:2x2x1
jax: 0.10.0
libtpu: 0.0.40
codegen_flags: <defaults>
</compile_context>

<pallas_src>
import functools

import jax
import jax.numpy as jnp
from jax.experimental import pallas as pl
from jax.experimental.pallas import tpu as pltpu

LN_EPS = 1e-5
_LANE = 128
_SUBLANE = 8


def _round_up(x, m):
    return (x + m - 1) // m * m


def news_embed_kernel(we_ref, wproj_ref, tbias_ref, gamma_ref, beta_ref, out_ref, *, h_valid):
    # we_ref    : (tb, Lp, Dwp) bf16  gathered word embeddings (zero-padded)
    # wproj_ref : (Dwp, Hp)     bf16  word_proj weight (zero-padded)
    # tbias_ref : (tb, 1, Hp)   f32   topic_e @ w_topic + b_topic + b_word (zero-padded)
    # gamma_ref : (1, 1, Hp)    f32   LN gamma (zero-padded past h_valid)
    # beta_ref  : (1, 1, Hp)    f32   LN beta  (zero-padded past h_valid)
    # out_ref   : (tb, Lp, Hp)  bf16
    tb, lp, dwp = we_ref.shape
    hp = out_ref.shape[-1]

    # One lane-dense MXU matmul per grid step: (tb*Lp, Dwp) @ (Dwp, Hp), f32 accumulation.
    x = jnp.dot(we_ref[...].reshape(tb * lp, dwp), wproj_ref[...],
                preferred_element_type=jnp.float32)
    x = x.reshape(tb, lp, hp)

    # Per-batch topic projection + combined biases added in f32 (no bf16 bias quantization).
    x = x + tbias_ref[...]

    inv_h = 1.0 / h_valid
    # Padded Hp lanes of x are exactly zero (weights / topic-bias / padded feature lanes are
    # zero by construction), so plain lane sums of x and x*x equal the valid-column sums.
    # E[x^2] - mean^2 avoids the iota/compare/select masking entirely.
    mean = jnp.sum(x, axis=-1, keepdims=True) * inv_h
    var = jnp.sum(x * x, axis=-1, keepdims=True) * inv_h - mean * mean
    var = jnp.maximum(var, 0.0)  # guard tiny negative from cancellation on padded/zero rows
    y = (x - mean) * jax.lax.rsqrt(var + LN_EPS)

    # Padded gamma/beta lanes are zero -> padded output lanes are zero (sliced off outside).
    out_ref[...] = (y * gamma_ref[...] + beta_ref[...]).astype(out_ref.dtype)
    # TODO(synk): dropout omitted (inference / eval-mode identity).


def prepare_params(params):
    """One-time, per-parameter-set construction of kernel-ready constants (hoisted out of
    the per-call forward so the padded bf16 weight is not rebuilt every step)."""
    Dw, H = params["w_word"].shape
    Dt = params["w_topic"].shape[0]
    Dwp = _round_up(Dw, _LANE)
    Hp = _round_up(H, _LANE)

    w = jnp.zeros((Dwp, Hp), jnp.float32).at[:Dw, :H].set(params["w_word"])
    gamma = jnp.zeros((1, 1, Hp), jnp.float32).at[0, 0, :H].set(params["gamma"].reshape(H))
    beta = jnp.zeros((1, 1, Hp), jnp.float32).at[0, 0, :H].set(params["beta"].reshape(H))

    return dict(
        word_emb_bf16=params["word_emb"].astype(jnp.bfloat16),
        topic_emb=params["topic_emb"],                              # f32
        w_topic=params["w_topic"],                                  # f32
        bias=(params["b_word"] + params["b_topic"]).reshape(H),     # f32 combined bias
        w_word_p=w.astype(jnp.bfloat16),
        gamma_p=gamma,
        beta_p=beta,
        dims=(Dw, Dt, H, Dwp, Hp),
    )


def news_embedding_forward(word_ids, topic_ids, fused, *,
                           rows_target=2048, vmem_tile_budget_bytes=10 << 20):
    """word_ids: (B, L) int32, topic_ids: (B,) int32 -> (B, L, H) bfloat16."""
    B, L = word_ids.shape
    Dw, Dt, H, Dwp, Hp = fused["dims"]
    Lp = _round_up(L, _SUBLANE)

    # ---- batch-tile selection --------------------------------------------------------
    # Per-step VMEM (bytes) per batch element: double-buffered bf16 word block + bf16 out
    # block + f32 topic row.  The 10 MiB default budget fits v5e's 16 MiB scoped-VMEM
    # default and v7x's 32 MiB scoped / 64 MiB physical VMEM; raise vmem_limit_bytes via
    # CompilerParams only if this budget is enlarged.
    per_b = 4 * Lp * (Dwp + Hp) + 8 * Hp + 16
    tb = max(1, min(B, vmem_tile_budget_bytes // per_b, max(1, rows_target // Lp)))
    if tb >= B and B >= 2:
        tb = pl.cdiv(B, 2)          # >= 2 grid steps so v7x's two TensorCores both get work
    grid_b = pl.cdiv(B, tb)
    tb = pl.cdiv(B, grid_b)         # re-balance -> batch padding is < grid_b rows total
    Bp = tb * grid_b

    # ---- XLA-side gathers + tiny f32 topic projection ---------------------------------
    word_e = jnp.take(fused["word_emb_bf16"], word_ids, axis=0)            # (B, L, Dw) bf16
    word_e = jnp.pad(word_e, ((0, Bp - B), (0, Lp - L), (0, Dwp - Dw)))    # (Bp, Lp, Dwp)
    # TODO(synk): fuse this gather into the kernel (scalar-prefetch word_ids + DMA gather of
    # embedding-table rows) to drop the HBM round trip of the gathered activations.
    topic_e = jnp.take(fused["topic_emb"], topic_ids, axis=0)              # (B, Dt) f32
    tbias = topic_e @ fused["w_topic"] + fused["bias"]                     # (B, H)  f32, tiny
    tbias = jnp.pad(tbias, ((0, Bp - B), (0, Hp - H)))[:, None, :]         # (Bp, 1, Hp)

    cost = pl.CostEstimate(
        flops=2 * Bp * Lp * Dwp * Hp,
        transcendentals=Bp * Lp,                                   # one rsqrt per row
        bytes_accessed=(Bp * Lp * Dwp * 2 + Dwp * Hp * 2 + Bp * Hp * 4
                        + 2 * Hp * 4 + Bp * Lp * Hp * 2),
    )

    out = pl.pallas_call(
        functools.partial(news_embed_kernel, h_valid=H),
        out_shape=jax.ShapeDtypeStruct((Bp, Lp, Hp), jnp.bfloat16),   # bf16 out halves writeback
        grid_spec=pltpu.PrefetchScalarGridSpec(
            num_scalar_prefetch=0,
            grid=(grid_b,),
            in_specs=[
                pl.BlockSpec((tb, Lp, Dwp), lambda i: (i, 0, 0)),   # gathered word embeddings
                # NOTE(perf): constant-index blocks below are double-buffered by default; for
                # very large Dwp*Hp consider pipeline_mode=pl.Buffered(1) to reclaim VMEM.
                pl.BlockSpec((Dwp, Hp), lambda i: (0, 0)),          # word_proj weight (bf16)
                pl.BlockSpec((tb, 1, Hp), lambda i: (i, 0, 0)),     # f32 topic proj + biases
                pl.BlockSpec((1, 1, Hp), lambda i: (0, 0, 0)),      # ln gamma
                pl.BlockSpec((1, 1, Hp), lambda i: (0, 0, 0)),      # ln beta
            ],
            out_specs=pl.BlockSpec((tb, Lp, Hp), lambda i: (i, 0, 0)),
        ),
        compiler_params=pltpu.CompilerParams(dimension_semantics=("parallel",)),
        cost_estimate=cost,
    )(word_e, fused["w_word_p"], tbias, fused["gamma_p"], fused["beta_p"])

    # No-op slice when B, L, H are already tile-aligned (the common production case).
    return out[:B, :L, :H]


def init_params(key, vocab_size, num_topics, word_dim, topic_dim, hidden):
    ks = jax.random.split(key, 6)
    word_emb = jax.random.normal(ks[0], (vocab_size, word_dim), jnp.float32) * 0.02
    topic_emb = jax.random.normal(ks[1], (num_topics, topic_dim), jnp.float32) * 0.02
    # padding_idx=0 -> embedding row 0 is zeros
    word_emb = word_emb.at[0].set(0.0)
    topic_emb = topic_emb.at[0].set(0.0)
    w_word = jax.random.normal(ks[2], (word_dim, hidden), jnp.float32) * 0.05
    b_word = jax.random.normal(ks[3], (1, hidden), jnp.float32) * 0.01
    w_topic = jax.random.normal(ks[4], (topic_dim, hidden), jnp.float32) * 0.05
    b_topic = jax.random.normal(ks[5], (1, hidden), jnp.float32) * 0.01
    gamma = jnp.ones((1, hidden), jnp.float32)
    beta = jnp.zeros((1, hidden), jnp.float32)
    return dict(word_emb=word_emb, topic_emb=topic_emb,
                w_word=w_word, b_word=b_word,
                w_topic=w_topic, b_topic=b_topic,
                gamma=gamma, beta=beta)


def reference_forward(word_ids, topic_ids, params):
    # Pure-f32 reference matching the PyTorch module semantics (eval mode).
    we = jnp.take(params["word_emb"], word_ids, axis=0)
    te = jnp.take(params["topic_emb"], topic_ids, axis=0)
    wp = we @ params["w_word"] + params["b_word"]
    tp = te @ params["w_topic"] + params["b_topic"]
    x = wp + tp[:, None, :]
    mean = jnp.mean(x, axis=-1, keepdims=True)
    var = jnp.mean(jnp.square(x - mean), axis=-1, keepdims=True)
    return (x - mean) * jax.lax.rsqrt(var + LN_EPS) * params["gamma"] + params["beta"]


if __name__ == "__main__":
    # Small config: vocab=50, num_topics=10, word_dim=32, topic_dim=16, hidden=32
    B, L = 2, 8
    VOCAB, NTOPIC, DW, DT, H = 50, 10, 32, 16, 32

    key = jax.random.PRNGKey(0)
    k_param, k_wid, k_tid = jax.random.split(key, 3)
    params = init_params(k_param, VOCAB, NTOPIC, DW, DT, H)
    fused = prepare_params(params)

    word_ids = jax.random.randint(k_wid, (B, L), 0, VOCAB, dtype=jnp.int32)
    word_ids = word_ids.at[0, -1].set(0)  # exercise padding_idx
    topic_ids = jax.random.randint(k_tid, (B,), 0, NTOPIC, dtype=jnp.int32)

    out = news_embedding_forward(word_ids, topic_ids, fused)
    out = jax.block_until_ready(out)

    ref = reference_forward(word_ids, topic_ids, params)
    assert out.shape == (B, L, H)
    # bf16 matmul inputs and bf16 output (f32 accumulation + f32 bias/LN inside) -> loosen
    # tolerance vs the pure-f32 reference.
    assert jnp.allclose(out.astype(jnp.float32), ref, atol=3e-2, rtol=2e-2), "mismatch vs reference"
    print("KERNEL_OK")
</pallas_src>

<mosaic_0001>
module attributes {stable_mosaic.version = 11 : i64} {
  func.func @news_embed_kernel(%arg0: i32, %arg1: memref<1x8x128xbf16, #tpu.memory_space<vmem>>, %arg2: memref<128x128xbf16, #tpu.memory_space<vmem>>, %arg3: memref<1x1x128xf32, #tpu.memory_space<vmem>>, %arg4: memref<1x1x128xf32, #tpu.memory_space<vmem>>, %arg5: memref<1x1x128xf32, #tpu.memory_space<vmem>>, %arg6: memref<1x8x128xbf16, #tpu.memory_space<vmem>>) attributes {dimension_semantics = [#tpu.dimension_semantics<parallel>], iteration_bounds = array<i64: 2>, scalar_prefetch = 0 : i64, scratch_operands = 0 : i64, tpu.core_type = #tpu.core_type<tc>, window_params = [{transform_indices = @transform_0, window_bounds = array<i64: 1, 8, 128>}, {pipeline_mode = #tpu.pipeline_mode<synchronous>, transform_indices = @transform_1, window_bounds = array<i64: 128, 128>}, {transform_indices = @transform_2, window_bounds = array<i64: 1, 1, 128>}, {pipeline_mode = #tpu.pipeline_mode<synchronous>, transform_indices = @transform_3, window_bounds = array<i64: 1, 1, 128>}, {pipeline_mode = #tpu.pipeline_mode<synchronous>, transform_indices = @transform_4, window_bounds = array<i64: 1, 1, 128>}, {transform_indices = @transform_5, window_bounds = array<i64: 1, 8, 128>}]} {
    %c0 = arith.constant 0 : index
    %c0_0 = arith.constant 0 : index
    %c0_1 = arith.constant 0 : index
    %0 = vector.load %arg1[%c0, %c0_0, %c0_1] : memref<1x8x128xbf16, #tpu.memory_space<vmem>>, vector<1x8x128xbf16>
    %1 = vector.shape_cast %0 : vector<1x8x128xbf16> to vector<8x128xbf16>
    %c0_2 = arith.constant 0 : index
    %c0_3 = arith.constant 0 : index
    %2 = vector.load %arg2[%c0_2, %c0_3] : memref<128x128xbf16, #tpu.memory_space<vmem>>, vector<128x128xbf16>
    %cst = arith.constant dense<0.000000e+00> : vector<8x128xf32>
    %3 = tpu.matmul %1, %2, %cst {dimension_numbers = #tpu.dot_dimension_numbers<[1], [0], [0], [1], [0, 0, 1, 1], [], []>} : vector<8x128xbf16>, vector<128x128xbf16>, vector<8x128xf32> -> vector<8x128xf32>
    %4 = vector.shape_cast %3 : vector<8x128xf32> to vector<1x8x128xf32>
    %c0_4 = arith.constant 0 : index
    %c0_5 = arith.constant 0 : index
    %c0_6 = arith.constant 0 : index
    %5 = vector.load %arg3[%c0_4, %c0_5, %c0_6] : memref<1x1x128xf32, #tpu.memory_space<vmem>>, vector<1x1x128xf32>
    %6 = vector.broadcast %5 : vector<1x1x128xf32> to vector<1x8x128xf32>
    %7 = arith.addf %4, %6 : vector<1x8x128xf32>
    %cst_7 = arith.constant dense<0.000000e+00> : vector<1x8xf32>
    %8 = vector.multi_reduction <add>, %7, %cst_7 [2] : vector<1x8x128xf32> to vector<1x8xf32>
    %9 = vector.shape_cast %8 : vector<1x8xf32> to vector<1x8x1xf32>
    %cst_8 = arith.constant 3.125000e-02 : f32
    %10 = vector.broadcast %cst_8 : f32 to vector<1x8x1xf32>
    %11 = arith.mulf %9, %10 : vector<1x8x1xf32>
    %12 = arith.mulf %7, %7 : vector<1x8x128xf32>
    %cst_9 = arith.constant dense<0.000000e+00> : vector<1x8xf32>
    %13 = vector.multi_reduction <add>, %12, %cst_9 [2] : vector<1x8x128xf32> to vector<1x8xf32>
    %14 = vector.shape_cast %13 : vector<1x8xf32> to vector<1x8x1xf32>
    %cst_10 = arith.constant 3.125000e-02 : f32
    %15 = vector.broadcast %cst_10 : f32 to vector<1x8x1xf32>
    %16 = arith.mulf %14, %15 : vector<1x8x1xf32>
    %17 = arith.mulf %11, %11 : vector<1x8x1xf32>
    %18 = arith.subf %16, %17 : vector<1x8x1xf32>
    %cst_11 = arith.constant 0.000000e+00 : f32
    %19 = vector.broadcast %cst_11 : f32 to vector<1x8x1xf32>
    %20 = arith.maximumf %18, %19 : vector<1x8x1xf32>
    %21 = vector.broadcast %11 : vector<1x8x1xf32> to vector<1x8x128xf32>
    %22 = arith.subf %7, %21 : vector<1x8x128xf32>
    %cst_12 = arith.constant 9.99999974E-6 : f32
    %23 = vector.broadcast %cst_12 : f32 to vector<1x8x1xf32>
    %24 = arith.addf %20, %23 : vector<1x8x1xf32>
    %25 = math.rsqrt %24 : vector<1x8x1xf32>
    %26 = vector.broadcast %25 : vector<1x8x1xf32> to vector<1x8x128xf32>
    %27 = arith.mulf %22, %26 : vector<1x8x128xf32>
    %c0_13 = arith.constant 0 : index
    %c0_14 = arith.constant 0 : index
    %c0_15 = arith.constant 0 : index
    %28 = vector.load %arg4[%c0_13, %c0_14, %c0_15] : memref<1x1x128xf32, #tpu.memory_space<vmem>>, vector<1x1x128xf32>
    %29 = vector.broadcast %28 : vector<1x1x128xf32> to vector<1x8x128xf32>
    %30 = arith.mulf %27, %29 : vector<1x8x128xf32>
    %c0_16 = arith.constant 0 : index
    %c0_17 = arith.constant 0 : index
    %c0_18 = arith.constant 0 : index
    %31 = vector.load %arg5[%c0_16, %c0_17, %c0_18] : memref<1x1x128xf32, #tpu.memory_space<vmem>>, vector<1x1x128xf32>
    %32 = vector.broadcast %31 : vector<1x1x128xf32> to vector<1x8x128xf32>
    %33 = arith.addf %30, %32 : vector<1x8x128xf32>
    %34 = arith.truncf %33 : vector<1x8x128xf32> to vector<1x8x128xbf16>
    %c0_19 = arith.constant 0 : index
    %c0_20 = arith.constant 0 : index
    %c0_21 = arith.constant 0 : index
    %35 = vector.load %arg6[%c0_19, %c0_20, %c0_21] : memref<1x8x128xbf16, #tpu.memory_space<vmem>>, vector<1x8x128xbf16>
    tpu.vector_store %arg6[%c0_19, %c0_20, %c0_21], %34 {strides = array<i32>} : memref<1x8x128xbf16, #tpu.memory_space<vmem>>, vector<1x8x128xbf16>,
    return
  }
  func.func @transform_0(%arg0: i32) -> (i32, i32, i32) {
    %c0_i32 = arith.constant 0 : i32
    %c0_i32_0 = arith.constant 0 : i32
    %c0_i32_1 = arith.constant 0 : i32
    return %arg0, %c0_i32, %c0_i32_0 : i32, i32, i32
  }
  func.func @transform_1(%arg0: i32) -> (i32, i32) {
    %c0_i32 = arith.constant 0 : i32
    %c0_i32_0 = arith.constant 0 : i32
    %c0_i32_1 = arith.constant 0 : i32
    return %c0_i32, %c0_i32_0 : i32, i32
  }
  func.func @transform_2(%arg0: i32) -> (i32, i32, i32) {
    %c0_i32 = arith.constant 0 : i32
    %c0_i32_0 = arith.constant 0 : i32
    %c0_i32_1 = arith.constant 0 : i32
    return %arg0, %c0_i32, %c0_i32_0 : i32, i32, i32
  }
  func.func @transform_3(%arg0: i32) -> (i32, i32, i32) {
    %c0_i32 = arith.constant 0 : i32
    %c0_i32_0 = arith.constant 0 : i32
    %c0_i32_1 = arith.constant 0 : i32
    %c0_i32_2 = arith.constant 0 : i32
    return %c0_i32, %c0_i32_0, %c0_i32_1 : i32, i32, i32
  }
  func.func @transform_4(%arg0: i32) -> (i32, i32, i32) {
    %c0_i32 = arith.constant 0 : i32
    %c0_i32_0 = arith.constant 0 : i32
    %c0_i32_1 = arith.constant 0 : i32
    %c0_i32_2 = arith.constant 0 : i32
    return %c0_i32, %c0_i32_0, %c0_i32_1 : i32, i32, i32
  }
  func.func @transform_5(%arg0: i32) -> (i32, i32, i32) {
    %c0_i32 = arith.constant 0 : i32
    %c0_i32_0 = arith.constant 0 : i32
    %c0_i32_1 = arith.constant 0 : i32
    return %arg0, %c0_i32, %c0_i32_0 : i32, i32, i32
  }
}

</mosaic_0001>

<bundles_post_ra>
// kernel: tpu_custom_call.1
= control target key start
LH: loop header
LB: loop body
LE: loop exit
PB: predicated region body
PF: predicated region fallthrough
CT: control target
= control target key end

     0   :  { %10 = vsyncpa [#allocation3], 0  ;;  %s1024_s0 = inlined_call_operand.hbm [shape: bf16[2,8,128], index: 0, kind: input, shape index: {}]   ;;  %s1025_s1 = inlined_call_operand.hbm [shape: bf16[128,128], index: 1, kind: input, shape index: {}]   ;;  %s1026_s2 = inlined_call_operand.vmem [shape: f32[2,1,128], index: 2, kind: input, shape index: {}]   ;;  %s1027_s3 = inlined_call_operand.vmem [shape: f32[1,1,128], index: 3, kind: input, shape index: {}]   ;;  %s1028_s4 = inlined_call_operand.vmem [shape: f32[1,1,128], index: 4, kind: input, shape index: {}]   ;;  %s1029_s5 = inlined_call_operand.hbm [shape: bf16[2,8,128], index: 5, kind: output, shape index: {}]  }
   0x1   :  { %12 = vsyncpa [#allocation3 + $0x1], 0 }
   0x2   :  { %13 = vsyncpa [#allocation6], 0 }
   0x3   :  { %14 = vsyncpa [#allocation4], 0 }
   0x4   :  { %16 = vsyncpa [#allocation4 + $0x1], 0  ;;  %s810_s18 = smov 0   ;;  %s812_s19 = smov 0  }
   0x5   :  { %s814_s20 = smov 0   ;;  %s816_s21 = smov 0  }
   0x6 LB: > { %s831_s22 = sadd.s32 4294967295, %s771_s21   ;;  %s518_s23 = sadd.s32 4294967294, %s771_s21   ;;  %s771_s21 = sphi %s816_s21, %s1049_s21   ;;  %s767_s20 = sphi %s814_s20, %s1048_s20   ;;  %s763_s19 = sphi %s812_s19, %s1047_s19   ;;  %s759_s18 = sphi %s810_s18, %s1046_s18  }
   0x7   : > { %p42_p0 = scmp.ne.s32.totalorder %s763_s19, %s759_s18  ;;  %p1030_p1 = scmp.eq.s32.totalorder %s831_s22, 0 }
   0x8   : > { %p161_p3 = scmp.eq.s32.totalorder %s518_s23, 1  ;;  %p519_p5 = scmp.ge.s32.totalorder %s771_s21, 1 }
   0x9   : > { %p840_p4 = por %p1030_p1, %p42_p0  ;;  %p168_p7 = scmp.lt.s32.totalorder %s771_s21, 3 }
   0xa   : > { %p845_p6 = por %p161_p3, %p42_p0  ;;  %s773_s27 = smov [#allocation5]  }
   0xb   : > { %s1033_s24 = scalar_select %p840_p4, 1, 0 }
   0xc   : > { %s1034_s25 = scalar_select %p845_p6, 1, 0 }
   0xd   : > { %p850_p8 = pnand %p519_p5, %p168_p7  ;;  %s180_s28 = sshll.u32 %s773_s27, 4  ;;  %s854_s28 = int_to_ptr.vmem [resolvable:$true] %s180_s28 }
   0xe   : > { %s866_s30 = sadd.s32 1, %s771_s21   ;;  %s29_s6 = sadd.s32 1, %s767_s20 }
   0xf   : > { %s1035_s26 = scalar_select %p850_p8, 1, 0 }
  0x10   : > { %p580_p9 = pneg %p850_p8  ;;  %s26_s7 = ssub.s32 %s771_s21, %s866_s30 }
  0x11   : > { %s643_s10 = scalar_lea.hbm %s1025_s1, 1024 }
  0x12   : > { %p861_p11 = pnand %p580_p9, %p1030_p1  ;;  %p644_p12 = scmp.ne.s32.totalorder %s1025_s1, %s643_s10 }
  0x13   : > { %p650_p5 = scmp.lt.u32.totalorder %s643_s10, %s1025_s1 }
  0x14   : > { %p645_p13 = pneg %p861_p11 }
  0x16   : > { %p646_p0 = pnand %p645_p13, %p644_p12 }
  0x18   : > { %p647_p3 = pneg %p646_p0 }
  0x1a   : > { %p652_p7 = pnand %p650_p5, %p647_p3 }
  0x1c   : > { %655 = shalt.err (!%p652_p7)
}
  0x1d   : > { %s656_s15 = scalar_lea.vmem %s854_s28, 1024  ;;  %p664_p2 = scmp.lt.s32.totalorder %s854_s28, %s854_s28 }
  0x1e   : > { %p657_p9 = scmp.ne.s32.totalorder %s854_s28, %s656_s15  ;;  %p665_p6 = scmp.lt.s32.totalorder %s656_s15, %s656_s15 }
  0x20   : > { %p659_p10 = pnand %p657_p9, %p645_p13  ;;  %p666_p4 = por %p665_p6, %p664_p2 }
  0x22   : > { %p660_p1 = pneg %p659_p10 }
  0x24   : > { %p667_p8 = pnand %p666_p4, %p660_p1 }
  0x26   : > { %670 = shalt.err (!%p667_p8)
}
  0x27   : > { %s774_s16 = smov 64   ;;  %s775_s17 = smov 4  }
  0x28   : > { %583 = dma.hbm_to_vmem [thread:$0]  (!%p861_p11), %s1025_s1, 1024, %s854_s28, [#allocation6], %s774_s16, %s774_s16, %s775_s17  }
  0x29   : > { %p27_p2 = scmp.eq.s32.totalorder %s26_s7, 0  ;;  %p36_p1 = scmp.ne.s32.totalorder %s767_s20, %s763_s19 }
  0x2a   : > { %p37_p4 = scmp.eq.s32.totalorder %s771_s21, 0  ;;  %p593_p6 = scmp.lt.s32.totalorder %s771_s21, 2 }
  0x2b   : > { %s897_s8 = scalar_select %p27_p2, %s767_s20, %s29_s6  }
  0x2c   : > { %p38_p8 = por %p37_p4, %p36_p1  ;;  %p1037_p10 = scmp.eq.s32.totalorder %s831_s22, 1 }
  0x2d   : > { %s200_s10 = sand.u32 1, %s767_s20   ;;  %s523_s11 = sshll.u32 %s771_s21, 6 }
  0x2e   : > { %p901_p12 = por %p1037_p10, %p36_p1  ;;  %s522_s12 = sshll.u32 %s200_s10, 2 }
  0x2f   : > { %s910_s14 = scalar_lea.hbm %s1024_s0, %s523_s11  ;;  %s204_s28 = scalar_lea.vmem [#allocation2], %s522_s12 }
  0x30   : > { %s211_s6 = sshll.u32 %s204_s28, 4  ;;  %p912_p11 = pnand %p593_p6, %p38_p8  ;;  %s916_s6 = int_to_ptr.vmem [resolvable:$true] %s211_s6 }
  0x31   : > { %s201_s15 = scalar_lea.sflag [#allocation3], %s200_s10  ;;  %s671_s16 = scalar_lea.hbm %s910_s14, 64 }
  0x32   : > { %p672_p13 = scmp.ne.s32.totalorder %s910_s14, %s671_s16  ;;  %p673_p0 = pneg %p912_p11 }
  0x33   : > { %s676_s27 = scalar_lea.hbm %s1024_s0, 128  ;;  %p677_p7 = scmp.lt.u32.totalorder %s910_s14, %s1024_s0 }
  0x34   : > { %p674_p3 = pnand %p673_p0, %p672_p13  ;;  %p678_p9 = scmp.lt.u32.totalorder %s676_s27, %s671_s16 }
  0x35   : > { %p680_p1 = scmp.lt.u32.totalorder %s671_s16, %s910_s14 }
  0x36   : > { %p675_p5 = pneg %p674_p3  ;;  %p679_p2 = por %p678_p9, %p677_p7 }
  0x38   : > { %p681_p4 = por %p680_p1, %p679_p2 }
  0x3a   : > { %p682_p6 = pnand %p681_p4, %p675_p5 }
  0x3c   : > { %685 = shalt.err (!%p682_p6)
}
  0x3d   : > { %s686_s10 = scalar_lea.vmem %s916_s6, 64  ;;  %s776_s29 = smov [#allocation2]  }
  0x3e   : > { %p687_p8 = scmp.ne.s32.totalorder %s916_s6, %s686_s10  ;;  %s691_s13 = sshll.u32 %s776_s29, 4  ;;  %s692_s13 = int_to_ptr.vmem [resolvable:$false] %s691_s13 }
  0x3f   : > { %s693_s28 = scalar_lea.vmem %s692_s13, 128  ;;  %p694_p3 = scmp.lt.s32.totalorder %s916_s6, %s692_s13 }
  0x40   : > { %p689_p10 = pnand %p687_p8, %p673_p0  ;;  %p695_p7 = scmp.lt.s32.totalorder %s693_s28, %s686_s10 }
  0x42   : > { %p690_p13 = pneg %p689_p10  ;;  %p696_p9 = por %p695_p7, %p694_p3 }
  0x44   : > { %p697_p2 = pnand %p696_p9, %p690_p13 }
  0x46   : > { %700 = shalt.err (!%p697_p2)
}
  0x47   : > { %587 = dma.hbm_to_vmem [thread:$0]  (!%p912_p11), %s910_s14, 64, %s916_s6, %s201_s15  }
  0x48   : > { %p1040_p5 = scmp.ne.s32.totalorder %s1035_s26, 0 }
  0x49   : > { %s946_s16 = sand.u32 (!%p1040_p5), 1, %s763_s19   ;;  %p1041_p0 = scmp.ne.s32.totalorder (!%p1040_p5), %s1033_s24, 0 }
  0x4a   : > { %226 = sbr.rel (%p1040_p5) target bundleno = 519 (0x207), region = 40  ;;  %s525_s17 = sshll.u32 (!%p1040_p5), %s946_s16, 2 }
  0x4b   : > { %s229_s23 = scalar_lea.sflag (!%p1040_p5), [#allocation3], %s946_s16  ;;  %s952_s27 = scalar_lea.vmem (!%p1040_p5), [#allocation2], %s525_s17 }
  0x51   : > { %746 = dma.done.wait (%p1041_p0), %s229_s23, 64  }
  0x52   : > { %748 = vsyncadd (%p1041_p0), %s229_s23, 4294967232  ;;  %p1042_p11 = scmp.eq.s32.totalorder %s831_s22, 0 }
  0x54   : > { %750 = dma.done.wait (%p1042_p11), [#allocation6], 1024   ;;  %p1043_p1 = pmov %p1042_p11 }
  0x55   : > { %v777_v0 = vmov 0.0   ;;  %vm778_vm0 = vmmov 0   ;;  %v633_v1 = vld [vmem:[#allocation5] sm:$0xff]   ;;  %v634_v2 = vld [vmem:[#allocation5 + $0x8] sm:$0xff]   ;;  %v635_v3 = vld [vmem:[#allocation5 + $0x10] sm:$0xff]   ;;  %p266_p4 = scmp.lt.s32.totalorder %s831_s22, 1 }
  0x56   : > { %752 = vsyncadd (%p1043_p1), [#allocation6], 4294966272  ;;  %552 = vmatprep.subr.bf16.mxu0 %v777_v0  ;;  %568 = vmatprep.mubr.msk.bf16.mxu0 %vm778_vm0, %v777_v0  ;;  %v636_v4 = vld [vmem:[#allocation5 + $0x18] sm:$0xff]   ;;  %v637_v5 = vld [vmem:[#allocation5 + $0x20] sm:$0xff]   ;;  %s540_s10 = sshll.u32 %s831_s22, 6  ;;  %s265_s29 = scalar_lea.vmem [#allocation7], %s525_s17 }
  0x57   : > { %553 = vmatpush3.bf16.msra.mxu0 %v633_v1  ;;  %v638_v6 = vld [vmem:[#allocation5 + $0x28] sm:$0xff]   ;;  %v639_v7 = vld [vmem:[#allocation5 + $0x30] sm:$0xff]   ;;  %v640_v8 = vld [vmem:[#allocation5 + $0x38] sm:$0xff]   ;;  %s267_s24 = scalar_select %p266_p4, %s831_s22, 1 }
  0x58   : > { %554 = vmatprep.subr.bf16.mxu0 %v777_v0  ;;  %v270_v9 = vld [vmem:[%s952_s27] sm:$0xf]  ;;  %s429_s13 = sshll.u32 %s265_s29, 4  ;;  %s980_s27 = scalar_lea.hbm %s1029_s5, %s540_s10  ;;  %s982_s13 = int_to_ptr.vmem [resolvable:$true] %s429_s13 }
  0x59   : > { %s268_s6 = scalar_lea.vmem %s1026_s2, %s267_s24  ;;  %v537_v27 = vld [vmem:[%s1027_s3] ss:$0 sm:$0xff]  ;;  %s416_s24 = scalar_lea.sflag [#allocation4], %s946_s16 }
  0x5a   : > { %v536_v10 = vld [vmem:[%s268_s6] ss:$0 sm:$0xff]  ;;  %s701_s26 = scalar_lea.vmem %s982_s13, 64  ;;  %s779_s22 = smov [#allocation7]  }
  0x5b   : > { %555 = vmatpush3.bf16.msra.mxu0 %v634_v2  ;;  %v538_v29 = vld [vmem:[%s1028_s4] ss:$0 sm:$0xff]  ;;  %p702_p6 = scmp.ne.s32.totalorder %s982_s13, %s701_s26  ;;  %s705_s17 = sshll.u32 %s779_s22, 4  ;;  %s706_s17 = int_to_ptr.vmem [resolvable:$false] %s705_s17 }
  0x5c   : > { %556 = vmatprep.subr.bf16.mxu0 %v777_v0  ;;  %s707_s14 = scalar_lea.vmem %s706_s17, 128  ;;  %p708_p13 = scmp.lt.s32.totalorder %s982_s13, %s706_s17 }
  0x5d   : > { %p703_p8 = pnand %p702_p6, %p901_p12  ;;  %p709_p3 = scmp.lt.s32.totalorder %s707_s14, %s701_s26 }
  0x5f   : > { %557 = vmatpush3.bf16.msra.mxu0 %v635_v3  ;;  %p704_p10 = pneg %p703_p8  ;;  %p710_p7 = por %p709_p3, %p708_p13 }
  0x60   : > { %558 = vmatprep.subr.bf16.mxu0 %v777_v0 }
  0x61   : > { %p711_p9 = pnand %p710_p7, %p704_p10 }
  0x63   : > { %559 = vmatpush3.bf16.msra.mxu0 %v636_v4 }
  0x64   : > { %560 = vmatprep.subr.bf16.mxu0 %v777_v0 }
  0x67   : > { %561 = vmatpush3.bf16.msra.mxu0 %v637_v5 }
  0x68   : > { %562 = vmatprep.subr.bf16.mxu0 %v777_v0 }
  0x6b   : > { %563 = vmatpush3.bf16.msra.mxu0 %v638_v6 }
  0x6c   : > { %564 = vmatprep.subr.bf16.mxu0 %v777_v0 }
  0x6f   : > { %565 = vmatpush3.bf16.msra.mxu0 %v639_v7 }
  0x70   : > { %566 = vmatprep.subr.bf16.mxu0 %v777_v0 }
  0x73   : > { %567 = vmatpush3.bf16.msra.mxu0 %v640_v8 }
  0x76   : > { %569 = vmatmul.mubr.bf16.vlgmr.msra.gmra.mrb[0].mxu0 %v270_v9 }
 0x149   : > { %v369_v11 = vpop.f32.mrb[0].mxu0 }
 0x14a   : > { %v382_v12 = vadd.f32 %v536_v10, %v369_v11  ;;  %v570_v13 = vpop.f32.mrb[1].mxu0 }
 0x14b   : > { %v372_v14 = vpop.f32.mrb[2].mxu0 }
 0x14c   : > { %383 = vadd.xlane.f32.xlu0 %v382_v12  ;;  %v571_v15 = vpop.f32.mrb[3].mxu0  ;;  %v386_v16 = vmul.f32 %v382_v12, %v382_v12 }
 0x150   : > { %387 = vadd.xlane.f32.xlu0 %v386_v16 }
 0x1d9   : > { %v384_v17 = vpop.xlane.xlu0 %383 }
 0x1da   : > { %v385_v18 = vmul.f32 0.03125, %v384_v17 }
 0x1dc   : > { %v390_v20 = vmul.f32 %v385_v18, %v385_v18  ;;  %v393_v25 = vsub.f32 %v382_v12, %v385_v18 }
 0x1dd   : > { %v388_v19 = vpop.xlane.xlu0 %387 }
 0x1de   : > { %v389_v21 = vmul.f32 0.03125, %v388_v19 }
 0x1e0   : > { %v391_v22 = vsub.f32 %v389_v21, %v390_v20 }
 0x1e2   : > { %v392_v23 = vmax.f32 %v391_v22, 0.0 }
 0x1e4   : > { %v394_v24 = vadd.f32 1e-05, %v392_v23 }
 0x1e6   : > { %641 = vrsqrt.f32 %v394_v24 }
 0x1f0   : > { %v642_v26 = vpop.eup %641 }
 0x1f1   : > { %v396_v28 = vmul.f32 %v642_v26, %v393_v25 }
 0x1f3   : > { %v404_v30 = vmul.f32 %v537_v27, %v396_v28 }
 0x1f5   : > { %v412_v31 = vadd.f32 %v538_v29, %v404_v30 }
 0x1f7   : > { %v413_v32 = vpack.c.bf16 %v412_v31, %v412_v31 }
 0x1f9   : > { %414 = vst [vmem:[%s265_s29] sm:$0xf] %v413_v32 }
 0x1fa   : > { %714 = shalt.err (!%p711_p9)
}
 0x1fb   : > { %s715_s16 = scalar_lea.hbm %s980_s27, 64  ;;  %s719_s15 = scalar_lea.hbm %s1029_s5, 128 }
 0x1fc   : > { %p716_p2 = scmp.ne.s32.totalorder %s980_s27, %s715_s16  ;;  %p720_p11 = scmp.lt.u32.totalorder %s980_s27, %s1029_s5 }
 0x1fd   : > { %p721_p1 = scmp.lt.u32.totalorder %s719_s15, %s715_s16  ;;  %p723_p6 = scmp.lt.u32.totalorder %s715_s16, %s980_s27 }
 0x1fe   : > { %p717_p5 = pnand %p716_p2, %p901_p12 }
 0x1ff   : > { %p722_p4 = por %p721_p1, %p720_p11 }
 0x200   : > { %p718_p0 = pneg %p717_p5 }
 0x201   : > { %p724_p8 = por %p723_p6, %p722_p4 }
 0x203   : > { %p725_p10 = pnand %p724_p8, %p718_p0 }
 0x205   : > { %728 = shalt.err (!%p725_p10)
}
 0x206   : > { %578 = dma.vmem_to_hbm [thread:$0]  (%p901_p12), %s982_s13, 64, %s980_s27, %s416_s24  }
 0x207 PF: > { %s441_s10 = sand.u32 1, %s759_s18   ;;  %p1044_p13 = scmp.ne.s32.totalorder %s1034_s25, 0 }
 0x208   : > { %p1045_p3 = scmp.ge.s32.totalorder %s771_s21, 2  ;;  %s442_s29 = scalar_lea.sflag [#allocation4], %s441_s10 }
 0x20a   : > { %p589_p7 = pnand %p1045_p3, %p1044_p13 }
 0x20c   : > { %754 = dma.done.wait (!%p589_p7), %s442_s29, 64  }
 0x20d   : > { %756 = vsyncadd (!%p589_p7), %s442_s29, 4294967232  ;;  %p19_p9 = scmp.ge.s32.totalorder %s866_s30, 4   ;;  %s1046_s18 = smov %s763_s19 }
 0x20e   : > { %s1047_s19 = smov %s767_s20  ;;  %s1048_s20 = smov %s897_s8 }
 0x20f   : > { %s1049_s21 = smov %s866_s30  ;;  %21 = sbr.rel (!%p19_p9) target bundleno = 6 (0x6), region = 92 }
 0x216   :  { %447 = vsyncpa [#allocation3], 1 }
 0x217   :  { %449 = vsyncpa [#allocation3 + $0x1], 1 }
 0x218   :  { %450 = vsyncpa [#allocation6], 1 }
 0x219   :  { %451 = vsyncpa [#allocation4], 1 }
 0x21a   :  { %453 = vsyncpa [#allocation4 + $0x1], 1 }

</bundles_post_ra>
